<compile_context>
chip_gen: v6e
topology: v6e:2x2x1
jax: 0.10.0
libtpu: 0.0.40
codegen_flags: <defaults>
</compile_context>

<pallas_src>
import numpy as np
import jax
import jax.numpy as jnp
from jax.experimental import pallas as pl
from jax.experimental.pallas import tpu as pltpu


_LOG_2PI = float(np.log(2.0 * np.pi))
_LANE_WIDTH = 1024  # large multiple of 128 -> lane-dense, unmasked vst


def _log_gaussian_kernel(mu_ref, sigma_ref, z_ref, out_ref):
    """Elementwise log N(z; mu, sigma^2) on one VMEM tile (f32 compute)."""
    mu = mu_ref[...].astype(jnp.float32)
    sigma = sigma_ref[...].astype(jnp.float32)
    z = z_ref[...].astype(jnp.float32)

    sigma2 = sigma * sigma
    diff = z - mu
    inv_s2 = pl.reciprocal(sigma2, approx=False)  # EUP slot, exact
    # -0.5*log(2*pi*sigma^2) - (z-mu)^2 / (2*sigma^2)
    out = -0.5 * (_LOG_2PI + jnp.log(sigma2)) - 0.5 * (diff * diff) * inv_s2
    out_ref[...] = out.astype(out_ref.dtype)


def _pick_tile_rows(rows, itemsize):
    """VMEM-safe tile height for the (rows, _LANE_WIDTH) slab."""
    # Resident VMEM ~= 4 arrays (3 in + 1 out) x 2 pipeline buffers x tile_bytes.
    # f32, 512 x 1024  -> 2 MiB/buffer -> 16 MiB resident: safe on v7x (64 MiB VMEM).
    # f32, 1024 x 1024 -> 4 MiB/buffer -> 32 MiB resident: fine on v5e/v6e (128 MiB).
    base = 512
    try:
        if pltpu.get_tpu_info().vmem_capacity_bytes >= (100 << 20):
            base = 1024
    except Exception:
        pass  # unknown chip -> keep the conservative (v7x-safe) tile
    return min(rows, base)


def log_gaussian_prob(mu, sigma, z):
    """JAX wrapper matching torch forward(mu, sigma, z) elementwise semantics."""
    assert mu.shape == sigma.shape == z.shape
    assert mu.dtype == sigma.dtype == z.dtype
    orig_shape = mu.shape
    dtype = mu.dtype
    itemsize = jnp.dtype(dtype).itemsize
    total = int(np.prod(orig_shape)) if orig_shape else 1

    # Sublane packing: 8 rows/vreg for 32-bit, 16 for 16-bit (bf16) dtypes.
    pack = 8 if itemsize >= 4 else 16
    chunk = pack * _LANE_WIDTH

    # Flatten and pad the tail so the slab is (rows, _LANE_WIDTH) with
    # rows % pack == 0 -> full vreg occupancy, no masked partial stores.
    padded_total = ((total + chunk - 1) // chunk) * chunk
    pad = padded_total - total

    mu_f = mu.reshape(-1)
    sigma_f = sigma.reshape(-1)
    z_f = z.reshape(-1)
    if pad:
        mu_f = jnp.pad(mu_f, (0, pad))
        sigma_f = jnp.pad(sigma_f, (0, pad), constant_values=1)  # avoid log(0)
        z_f = jnp.pad(z_f, (0, pad))

    rows = padded_total // _LANE_WIDTH
    slab = (rows, _LANE_WIDTH)
    mu2 = mu_f.reshape(slab)
    sigma2 = sigma_f.reshape(slab)
    z2 = z_f.reshape(slab)

    tile_rows = _pick_tile_rows(rows, itemsize)
    grid = (pl.cdiv(rows, tile_rows),)

    tile_bytes = tile_rows * _LANE_WIDTH * itemsize
    resident = 4 * 2 * tile_bytes  # 4 arrays x double buffering
    vmem_limit = int(max(32 << 20, min(2 * resident, 100 << 20)))

    block = (tile_rows, _LANE_WIDTH)
    spec = pl.BlockSpec(block, lambda i: (i, 0))

    n = padded_total
    cost = pl.CostEstimate(
        flops=8 * n,
        transcendentals=2 * n,          # log + reciprocal per element
        bytes_accessed=4 * n * itemsize  # 3 reads + 1 write
    )

    out = pl.pallas_call(
        _log_gaussian_kernel,
        out_shape=jax.ShapeDtypeStruct(slab, dtype),
        grid=grid,
        in_specs=[spec, spec, spec],
        out_specs=pl.BlockSpec(block, lambda i: (i, 0)),
        compiler_params=pltpu.CompilerParams(
            dimension_semantics=("parallel",),   # shard row tiles across TCs (v7x)
            vmem_limit_bytes=vmem_limit,
        ),
        cost_estimate=cost,
    )(mu2, sigma2, z2)

    return out.reshape(-1)[:total].reshape(orig_shape)


def _reference(mu, sigma, z):
    s2 = sigma ** 2
    return -0.5 * jnp.log(2 * np.pi * s2) - (z - mu) ** 2 / (2 * s2)


if __name__ == "__main__":
    key = jax.random.PRNGKey(0)
    k_mu, k_sig, k_z = jax.random.split(key, 3)

    # Small NCHW-shaped inputs (module is elementwise; no learned params).
    shape = (2, 4, 16, 16)
    mu = jax.random.normal(k_mu, shape, dtype=jnp.float32)
    sigma = jax.random.uniform(k_sig, shape, dtype=jnp.float32,
                               minval=0.5, maxval=2.0)  # strictly positive
    z = jax.random.normal(k_z, shape, dtype=jnp.float32)

    out = log_gaussian_prob(mu, sigma, z)
    out = jax.block_until_ready(out)

    ref = _reference(mu, sigma, z)
    np.testing.assert_allclose(np.asarray(out), np.asarray(ref),
                               rtol=1e-5, atol=1e-5)

    print("KERNEL_OK")
</pallas_src>

<mosaic_0001>
module attributes {stable_mosaic.version = 11 : i64} {
  func.func @_log_gaussian_kernel(%arg0: i32, %arg1: memref<8x1024xf32, #tpu.memory_space<vmem>>, %arg2: memref<8x1024xf32, #tpu.memory_space<vmem>>, %arg3: memref<8x1024xf32, #tpu.memory_space<vmem>>, %arg4: memref<8x1024xf32, #tpu.memory_space<vmem>>) attributes {dimension_semantics = [#tpu.dimension_semantics<parallel>], iteration_bounds = array<i64: 1>, scalar_prefetch = 0 : i64, scratch_operands = 0 : i64, tpu.core_type = #tpu.core_type<tc>, window_params = [{transform_indices = @transform_0, window_bounds = array<i64: 8, 1024>}, {transform_indices = @transform_1, window_bounds = array<i64: 8, 1024>}, {transform_indices = @transform_2, window_bounds = array<i64: 8, 1024>}, {transform_indices = @transform_3, window_bounds = array<i64: 8, 1024>}]} {
    %c0 = arith.constant 0 : index
    %c0_0 = arith.constant 0 : index
    %0 = vector.load %arg1[%c0, %c0_0] : memref<8x1024xf32, #tpu.memory_space<vmem>>, vector<8x1024xf32>
    %c0_1 = arith.constant 0 : index
    %c0_2 = arith.constant 0 : index
    %1 = vector.load %arg2[%c0_1, %c0_2] : memref<8x1024xf32, #tpu.memory_space<vmem>>, vector<8x1024xf32>
    %c0_3 = arith.constant 0 : index
    %c0_4 = arith.constant 0 : index
    %2 = vector.load %arg3[%c0_3, %c0_4] : memref<8x1024xf32, #tpu.memory_space<vmem>>, vector<8x1024xf32>
    %3 = arith.mulf %1, %1 : vector<8x1024xf32>
    %4 = arith.subf %2, %0 : vector<8x1024xf32>
    %5 = tpu.reciprocal %3 : vector<8x1024xf32> -> vector<8x1024xf32>
    %6 = math.log %3 : vector<8x1024xf32>
    %cst = arith.constant 1.83787704 : f32
    %7 = vector.broadcast %cst : f32 to vector<8x1024xf32>
    %8 = arith.addf %7, %6 : vector<8x1024xf32>
    %cst_5 = arith.constant -5.000000e-01 : f32
    %9 = vector.broadcast %cst_5 : f32 to vector<8x1024xf32>
    %10 = arith.mulf %9, %8 : vector<8x1024xf32>
    %11 = arith.mulf %4, %4 : vector<8x1024xf32>
    %cst_6 = arith.constant 5.000000e-01 : f32
    %12 = vector.broadcast %cst_6 : f32 to vector<8x1024xf32>
    %13 = arith.mulf %12, %11 : vector<8x1024xf32>
    %14 = arith.mulf %13, %5 : vector<8x1024xf32>
    %15 = arith.subf %10, %14 : vector<8x1024xf32>
    %c0_7 = arith.constant 0 : index
    %c0_8 = arith.constant 0 : index
    %16 = vector.load %arg4[%c0_7, %c0_8] : memref<8x1024xf32, #tpu.memory_space<vmem>>, vector<8x1024xf32>
    tpu.vector_store %arg4[%c0_7, %c0_8], %15 {strides = array<i32>} : memref<8x1024xf32, #tpu.memory_space<vmem>>, vector<8x1024xf32>,
    return
  }
  func.func @transform_0(%arg0: i32) -> (i32, i32) {
    %c0_i32 = arith.constant 0 : i32
    %c0_i32_0 = arith.constant 0 : i32
    return %arg0, %c0_i32 : i32, i32
  }
  func.func @transform_1(%arg0: i32) -> (i32, i32) {
    %c0_i32 = arith.constant 0 : i32
    %c0_i32_0 = arith.constant 0 : i32
    return %arg0, %c0_i32 : i32, i32
  }
  func.func @transform_2(%arg0: i32) -> (i32, i32) {
    %c0_i32 = arith.constant 0 : i32
    %c0_i32_0 = arith.constant 0 : i32
    return %arg0, %c0_i32 : i32, i32
  }
  func.func @transform_3(%arg0: i32) -> (i32, i32) {
    %c0_i32 = arith.constant 0 : i32
    %c0_i32_0 = arith.constant 0 : i32
    return %arg0, %c0_i32 : i32, i32
  }
}

</mosaic_0001>

<bundles_post_ra>
// kernel: tpu_custom_call.1
= control target key start
LH: loop header
LB: loop body
LE: loop exit
PB: predicated region body
PF: predicated region fallthrough
CT: control target
= control target key end

     0   :  { %8 = vsyncpa [#allocation3], 0  ;;  %s344_s0 = inlined_call_operand.hbm [shape: f32[8,1024], index: 0, kind: input, shape index: {}]   ;;  %s345_s1 = inlined_call_operand.hbm [shape: f32[8,1024], index: 1, kind: input, shape index: {}]   ;;  %s346_s2 = inlined_call_operand.hbm [shape: f32[8,1024], index: 2, kind: input, shape index: {}]   ;;  %s347_s3 = inlined_call_operand.hbm [shape: f32[8,1024], index: 3, kind: output, shape index: {}]  }
   0x1   :  { %9 = vsyncpa [#allocation6], 0 }
   0x2   :  { %10 = vsyncpa [#allocation4], 0  ;;  %s308_s12 = smov [#allocation5]   ;;  %s309_s14 = smov [#allocation2]  }
   0x3   :  { %s27_s13 = sshll.u32 %s308_s12, 4  ;;  %s17_s15 = sshll.u32 %s309_s14, 4  ;;  %s28_s13 = int_to_ptr.vmem [resolvable:$true] %s27_s13  ;;  %s18_s15 = int_to_ptr.vmem [resolvable:$true] %s17_s15 }
   0x4   :  { %s230_s16 = scalar_lea.vmem %s28_s13, 1024  ;;  %p235_p1 = scmp.lt.s32.totalorder %s28_s13, %s28_s13 }
   0x5   :  { %p231_p0 = scmp.ne.s32.totalorder %s28_s13, %s230_s16  ;;  %p236_p2 = scmp.lt.s32.totalorder %s230_s16, %s230_s16 }
   0x7   :  { %p237_p3 = por %p236_p2, %p235_p1 }
   0x9   :  { %p238_p4 = pnand %p237_p3, %p231_p0 }
   0xb   :  { %241 = shalt.err (!%p238_p4)
}
   0xc   :  { %30 = dma.hbm_to_vmem [thread:$0]  %s345_s1, 1024, %s28_s13, [#allocation6]  }
   0xd   :  { %s250_s19 = scalar_lea.vmem %s18_s15, 1024  ;;  %p255_p6 = scmp.lt.s32.totalorder %s18_s15, %s18_s15 }
   0xe   :  { %p251_p5 = scmp.ne.s32.totalorder %s18_s15, %s250_s19  ;;  %p256_p7 = scmp.lt.s32.totalorder %s250_s19, %s250_s19 }
  0x10   :  { %p257_p8 = por %p256_p7, %p255_p6 }
  0x12   :  { %p258_p9 = pnand %p257_p8, %p251_p5 }
  0x14   :  { %261 = shalt.err (!%p258_p9)
}
  0x15   :  { %20 = dma.hbm_to_vmem [thread:$0]  %s344_s0, 1024, %s18_s15, [#allocation3]  }
  0x16   :  { %s310_s22 = smov [#allocation7]  }
  0x17   :  { %s37_s23 = sshll.u32 %s310_s22, 4  ;;  %s38_s23 = int_to_ptr.vmem [resolvable:$true] %s37_s23 }
  0x18   :  { %s270_s24 = scalar_lea.vmem %s38_s23, 1024  ;;  %p275_p11 = scmp.lt.s32.totalorder %s38_s23, %s38_s23 }
  0x19   :  { %p271_p10 = scmp.ne.s32.totalorder %s38_s23, %s270_s24  ;;  %p276_p12 = scmp.lt.s32.totalorder %s270_s24, %s270_s24 }
  0x1b   :  { %p277_p13 = por %p276_p12, %p275_p11 }
  0x1d   :  { %p278_p0 = pnand %p277_p13, %p271_p10 }
  0x1f   :  { %281 = shalt.err (!%p278_p0)
}
  0x20   :  { %40 = dma.hbm_to_vmem [thread:$0]  %s346_s2, 1024, %s38_s23, [#allocation6]  }
  0x21   :  { %302 = dma.done.wait [#allocation3], 1024  }
  0x22   :  { %303 = vsyncadd [#allocation3], 4294966272 }
  0x23   :  { %304 = dma.done.wait [#allocation6], 2048  }
  0x24   :  { %305 = vsyncadd [#allocation6], 4294965248  ;;  %v58_v0 = vld [vmem:[#allocation5] sm:$0xff]  ;;  %v59_v2 = vld [vmem:[#allocation5 + $0x8] sm:$0xff]  ;;  %s311_s0 = smov [#allocation8]  }
  0x25   :  { %v74_v1 = vmul.f32 %v58_v0, %v58_v0  ;;  %v75_v3 = vmul.f32 %v59_v2, %v59_v2  ;;  %v60_v4 = vld [vmem:[#allocation5 + $0x10] sm:$0xff]  ;;  %v61_v5 = vld [vmem:[#allocation5 + $0x18] sm:$0xff]  ;;  %v50_v7 = vld [vmem:[#allocation2] sm:$0xff]  ;;  %s176_s2 = sshll.u32 %s311_s0, 4  ;;  %s177_s2 = int_to_ptr.vmem [resolvable:$true] %s176_s2 }
  0x26   :  { %v76_v6 = vmul.f32 %v60_v4, %v60_v4  ;;  %v66_v8 = vld [vmem:[#allocation7] sm:$0xff]  ;;  %v77_v10 = vmul.f32 %v61_v5, %v61_v5  ;;  %v51_v11 = vld [vmem:[#allocation2 + $0x8] sm:$0xff]  ;;  %v52_v15 = vld [vmem:[#allocation2 + $0x10] sm:$0xff]  ;;  %s282_s26 = scalar_lea.vmem %s177_s2, 1024  ;;  %p287_p2 = scmp.lt.s32.totalorder %s177_s2, %s177_s2 }
  0x27   :  { %190 = vrcp.f32 %v74_v1  ;;  %v62_v9 = vld [vmem:[#allocation5 + $0x20] sm:$0xff]  ;;  %v67_v12 = vld [vmem:[#allocation7 + $0x8] sm:$0xff]  ;;  %v82_v14 = vsub.f32 %v66_v8, %v50_v7  ;;  %v68_v16 = vld [vmem:[#allocation7 + $0x10] sm:$0xff]  ;;  %p283_p1 = scmp.ne.s32.totalorder %s177_s2, %s282_s26  ;;  %p288_p3 = scmp.lt.s32.totalorder %s282_s26, %s282_s26 }
  0x28   :  { %192 = vlog2.f32 %v74_v1  ;;  %v63_v13 = vld [vmem:[#allocation5 + $0x28] sm:$0xff]  ;;  %v78_v17 = vmul.f32 %v62_v9, %v62_v9  ;;  %v64_v18 = vld [vmem:[#allocation5 + $0x30] sm:$0xff]  ;;  %v83_v19 = vsub.f32 %v67_v12, %v51_v11  ;;  %v53_v20 = vld [vmem:[#allocation2 + $0x18] sm:$0xff]  ;;  %v84_v23 = vsub.f32 %v68_v16, %v52_v15 }
  0x29   :  { %194 = vrcp.f32 %v75_v3  ;;  %v69_v21 = vld [vmem:[#allocation7 + $0x18] sm:$0xff]  ;;  %v79_v22 = vmul.f32 %v63_v13, %v63_v13  ;;  %v130_v25 = vmul.f32 %v82_v14, %v82_v14  ;;  %v54_v26 = vld [vmem:[#allocation2 + $0x20] sm:$0xff]  ;;  %v80_v28 = vmul.f32 %v64_v18, %v64_v18  ;;  %v55_v31 = vld [vmem:[#allocation2 + $0x28] sm:$0xff]  ;;  %p289_p4 = por %p288_p3, %p287_p2 }
  0x2a   :  { %196 = vlog2.f32 %v75_v3  ;;  %v65_v24 = vld [vmem:[#allocation5 + $0x38] sm:$0xff]  ;;  %v70_v27 = vld [vmem:[#allocation7 + $0x20] sm:$0xff]  ;;  %v85_v29 = vsub.f32 %v69_v21, %v53_v20  ;;  %v131_v30 = vmul.f32 %v83_v19, %v83_v19  ;;  %v71_v32 = vld [vmem:[#allocation7 + $0x28] sm:$0xff]  ;;  %v132_v34 = vmul.f32 %v84_v23, %v84_v23 }
  0x2b   :  { %198 = vrcp.f32 %v76_v6  ;;  %v81_v33 = vmul.f32 %v65_v24, %v65_v24  ;;  %v86_v35 = vsub.f32 %v70_v27, %v54_v26  ;;  %v138_v37 = vmul.f32 0.5, %v130_v25  ;;  %v56_v38 = vld [vmem:[#allocation2 + $0x30] sm:$0xff]  ;;  %v57_v46 = vld [vmem:[#allocation2 + $0x38] sm:$0xff]  ;;  %p290_p5 = pnand %p289_p4, %p283_p1 }
  0x2c   :  { %200 = vlog2.f32 %v76_v6  ;;  %v72_v39 = vld [vmem:[#allocation7 + $0x30] sm:$0xff]  ;;  %v133_v41 = vmul.f32 %v85_v29, %v85_v29  ;;  %v87_v42 = vsub.f32 %v71_v32, %v55_v31  ;;  %v139_v45 = vmul.f32 0.5, %v131_v30  ;;  %v73_v47 = vld [vmem:[#allocation7 + $0x38] sm:$0xff] }
  0x2d   :  { %202 = vrcp.f32 %v77_v10  ;;  %v140_v49 = vmul.f32 0.5, %v132_v34  ;;  %v134_v50 = vmul.f32 %v86_v35, %v86_v35  ;;  %v88_v51 = vsub.f32 %v72_v39, %v56_v38 }
  0x2e   :  { %204 = vlog2.f32 %v77_v10  ;;  %v141_v57 = vmul.f32 0.5, %v133_v41  ;;  %v135_v58 = vmul.f32 %v87_v42, %v87_v42  ;;  %v89_v59 = vsub.f32 %v73_v47, %v57_v46 }
  0x2f   :  { %206 = vrcp.f32 %v78_v17  ;;  %v142_v3 = vmul.f32 0.5, %v134_v50  ;;  %v136_v4 = vmul.f32 %v88_v51, %v88_v51 }
  0x30   :  { %208 = vlog2.f32 %v78_v17  ;;  %v143_v12 = vmul.f32 0.5, %v135_v58  ;;  %v137_v13 = vmul.f32 %v89_v59, %v89_v59 }
  0x31   :  { %210 = vrcp.f32 %v79_v22  ;;  %v144_v21 = vmul.f32 0.5, %v136_v4 }
  0x32   :  { %212 = vlog2.f32 %v79_v22  ;;  %v145_v29 = vmul.f32 0.5, %v137_v13 }
  0x33   :  { %214 = vrcp.f32 %v80_v28 }
  0x34   :  { %v191_v36 = vpop.eup %190  ;;  %216 = vlog2.f32 %v80_v28 }
  0x35   :  { %v193_v40 = vpop.eup %192  ;;  %218 = vrcp.f32 %v81_v33  ;;  %v146_v54 = vmul.f32 %v191_v36, %v138_v37 }
  0x36   :  { %v195_v43 = vpop.eup %194  ;;  %v99_v44 = vmul.f32 0.6931472, %v193_v40  ;;  %220 = vlog2.f32 %v81_v33 }
  0x37   :  { %v197_v48 = vpop.eup %196  ;;  %v147_v63 = vmul.f32 %v195_v43, %v139_v45 }
  0x38   :  { %v199_v52 = vpop.eup %198  ;;  %v114_v53 = vadd.f32 1.837877, %v99_v44  ;;  %v101_v55 = vmul.f32 0.6931472, %v197_v48 }
  0x39   :  { %v201_v56 = vpop.eup %200  ;;  %v148_v2 = vmul.f32 %v199_v52, %v140_v49 }
  0x3a   :  { %v203_v60 = vpop.eup %202  ;;  %v122_v61 = vmul.f32 -0.5, %v114_v53  ;;  %v115_v62 = vadd.f32 1.837877, %v101_v55  ;;  %v103_v0 = vmul.f32 0.6931472, %v201_v56 }
  0x3b   :  { %v205_v1 = vpop.eup %204  ;;  %v149_v11 = vmul.f32 %v203_v60, %v141_v57 }
  0x3c   :  { %v207_v5 = vpop.eup %206  ;;  %v154_v6 = vsub.f32 %v122_v61, %v146_v54  ;;  %v123_v7 = vmul.f32 -0.5, %v115_v62  ;;  %v116_v8 = vadd.f32 1.837877, %v103_v0  ;;  %v105_v9 = vmul.f32 0.6931472, %v205_v1 }
  0x3d   :  { %v209_v10 = vpop.eup %208  ;;  %v150_v20 = vmul.f32 %v207_v5, %v142_v3 }
  0x3e   :  { %v211_v14 = vpop.eup %210  ;;  %162 = vst [vmem:[#allocation8] sm:$0xff] %v154_v6  ;;  %v155_v15 = vsub.f32 %v123_v7, %v147_v63  ;;  %v124_v16 = vmul.f32 -0.5, %v116_v8  ;;  %v117_v17 = vadd.f32 1.837877, %v105_v9  ;;  %v107_v18 = vmul.f32 0.6931472, %v209_v10 }
  0x3f   :  { %v213_v19 = vpop.eup %212  ;;  %v151_v28 = vmul.f32 %v211_v14, %v143_v12 }
  0x40   :  { %v215_v22 = vpop.eup %214  ;;  %163 = vst [vmem:[#allocation8 + $0x8] sm:$0xff] %v155_v15  ;;  %v156_v23 = vsub.f32 %v124_v16, %v148_v2  ;;  %v125_v24 = vmul.f32 -0.5, %v117_v17  ;;  %v118_v25 = vadd.f32 1.837877, %v107_v18  ;;  %v109_v26 = vmul.f32 0.6931472, %v213_v19 }
  0x41   :  { %v217_v27 = vpop.eup %216  ;;  %v152_v36 = vmul.f32 %v215_v22, %v144_v21 }
  0x42   :  { %v219_v30 = vpop.eup %218  ;;  %164 = vst [vmem:[#allocation8 + $0x10] sm:$0xff] %v156_v23  ;;  %v157_v31 = vsub.f32 %v125_v24, %v149_v11  ;;  %v126_v32 = vmul.f32 -0.5, %v118_v25  ;;  %v119_v33 = vadd.f32 1.837877, %v109_v26  ;;  %v111_v34 = vmul.f32 0.6931472, %v217_v27 }
  0x43   :  { %v221_v35 = vpop.eup %220  ;;  %v153_v44 = vmul.f32 %v219_v30, %v145_v29 }
  0x44   :  { %165 = vst [vmem:[#allocation8 + $0x18] sm:$0xff] %v157_v31  ;;  %v158_v37 = vsub.f32 %v126_v32, %v150_v20  ;;  %v127_v38 = vmul.f32 -0.5, %v119_v33  ;;  %v120_v39 = vadd.f32 1.837877, %v111_v34  ;;  %v113_v40 = vmul.f32 0.6931472, %v221_v35 }
  0x46   :  { %166 = vst [vmem:[#allocation8 + $0x20] sm:$0xff] %v158_v37  ;;  %v159_v41 = vsub.f32 %v127_v38, %v151_v28  ;;  %v128_v42 = vmul.f32 -0.5, %v120_v39  ;;  %v121_v43 = vadd.f32 1.837877, %v113_v40 }
  0x48   :  { %167 = vst [vmem:[#allocation8 + $0x28] sm:$0xff] %v159_v41  ;;  %v160_v45 = vsub.f32 %v128_v42, %v152_v36  ;;  %v129_v46 = vmul.f32 -0.5, %v121_v43 }
  0x4a   :  { %168 = vst [vmem:[#allocation8 + $0x30] sm:$0xff] %v160_v45  ;;  %v161_v47 = vsub.f32 %v129_v46, %v153_v44 }
  0x4c   :  { %169 = vst [vmem:[#allocation8 + $0x38] sm:$0xff] %v161_v47 }
  0x4d   :  { %293 = shalt.err (!%p290_p5)
}
  0x4e   :  { %179 = dma.vmem_to_hbm [thread:$0]  %s177_s2, 1024, %s347_s3, [#allocation4]  }
  0x4f   :  { %306 = dma.done.wait [#allocation4], 1024  }
  0x50   :  { %307 = vsyncadd [#allocation4], 4294966272 }
  0x51   :  { %183 = vsyncpa [#allocation3], 1 }
  0x52   :  { %184 = vsyncpa [#allocation6], 1 }
  0x53   :  { %185 = vsyncpa [#allocation4], 1 }

</bundles_post_ra>
